<compile_context>
chip_gen: v6e
topology: v6e:2x2x1
jax: 0.10.0
libtpu: 0.0.40
codegen_flags: <defaults>
</compile_context>

<pallas_src>
import numpy as np
import jax
import jax.numpy as jnp
from jax import lax
from jax.experimental import pallas as pl
from jax.experimental.pallas import tpu as pltpu

N_QUBITS = 4
DIM = 1 << N_QUBITS  # 16


def _round_up(v, m):
    return ((v + m - 1) // m) * m


def quantumnet_kernel(x_ref, preWT_ref, prebT_ref, Ucat_ref, W2T_ref, postbT_ref, oT_ref):
    # pre_net: (n_qubits, D_in) . (TB, D_in)^T -> (n_qubits, TB); bf16 operands, f32 acc.
    a = lax.dot_general(preWT_ref[...], x_ref[...],
                        dimension_numbers=(((1,), (1,)), ((), ())),
                        preferred_element_type=jnp.float32) + prebT_ref[...]
    theta = jnp.tanh(a) * (jnp.pi / 3.0)                       # (n_qubits, TB), |theta|<=pi/3

    # RY half-angle cos/sin via short Taylor series (|h| <= pi/6, err < 3e-6).
    h = 0.5 * theta
    h2 = h * h
    c = 1.0 + h2 * (-0.5 + h2 * (1.0 / 24.0 - h2 * (1.0 / 720.0)))      # (n_qubits, TB)
    s = h * (1.0 + h2 * (-1.0 / 6.0 + h2 * (1.0 / 120.0)))              # (n_qubits, TB)

    # Product state |psi0>[b, :] = prod_i (cos(th_i/2) if bit_i(b)==0 else sin(th_i/2)).
    # Basis-state bit masks generated in-kernel (pure VPU, already lane-dense).
    tb = x_ref.shape[0]
    row = lax.broadcasted_iota(jnp.int32, (DIM, tb), 0)                 # basis index per sublane
    psi0 = None
    for i in range(N_QUBITS):
        bit_i = (row & (1 << (N_QUBITS - 1 - i))) != 0                  # wire 0 = MSB
        f = jnp.where(bit_i, s[i:i + 1, :], c[i:i + 1, :])              # (DIM, TB)
        psi0 = f if psi0 is None else psi0 * f

    # psi = [Re(U); Im(U)] @ psi0 -> (2*DIM, TB); |psi|^2 + Z-sign + post_net weight folded
    # into W2T on the host, so output is one more small matmul.
    psi = jnp.dot(Ucat_ref[...], psi0, preferred_element_type=jnp.float32)
    oT_ref[...] = (jnp.dot(W2T_ref[...], psi * psi, preferred_element_type=jnp.float32)
                   + postbT_ref[...])


def quantumnet_forward(x, params, block_b=2048):
    """x: (B, input_dim), any float dtype (cast to bf16). Returns (B, n_classes) f32."""
    preWT, prebT, Ucat, W2T, postbT = params
    B, input_dim = x.shape
    n_classes = W2T.shape[0]

    # Lane-dense batch tiling: TB multiple of 128, capped by block_b, and chosen so the grid
    # has >= 2 steps when possible (v7x: 2 TensorCores share the "parallel" batch axis).
    bp128 = _round_up(B, 128)
    TB = min(block_b, max(128, _round_up(pl.cdiv(bp128, 2), 128)))
    Bp = _round_up(B, TB)

    if x.dtype != jnp.bfloat16:
        x = x.astype(jnp.bfloat16)
    if Bp != B:
        x = jnp.pad(x, ((0, Bp - B), (0, 0)))   # pad rows discarded by the final slice

    full = lambda shp: pl.BlockSpec(shp, lambda i: (0, 0))   # resident weights / constants

    outT = pl.pallas_call(
        quantumnet_kernel,
        out_shape=jax.ShapeDtypeStruct((n_classes, Bp), jnp.float32),
        grid=(Bp // TB,),
        in_specs=[
            pl.BlockSpec((TB, input_dim), lambda i: (i, 0)),   # x tile (double-buffered DMA)
            full(preWT.shape), full(prebT.shape),
            full(Ucat.shape), full(W2T.shape), full(postbT.shape),
        ],
        out_specs=pl.BlockSpec((n_classes, TB), lambda i: (0, i)),
        compiler_params=pltpu.CompilerParams(dimension_semantics=("parallel",)),
    )(x, preWT, prebT, Ucat, W2T, postbT)

    return outT[:, :B].T


# ---------------- host-side circuit compilation & constant folding (plain numpy) ----------------

def build_circuit_unitary(circuit, q_params, n_qubits):
    dim = 1 << n_qubits
    I2 = np.eye(2, dtype=np.complex128)
    U = np.eye(dim, dtype=np.complex128)

    def embed(G, wire):  # wire 0 is the most significant bit (default.qubit convention)
        M = np.eye(1, dtype=np.complex128)
        for w in range(n_qubits):
            M = np.kron(M, G if w == wire else I2)
        return M

    def cnot_full(ctrl, tgt):
        M = np.zeros((dim, dim), dtype=np.complex128)
        for b in range(dim):
            cb = (b >> (n_qubits - 1 - ctrl)) & 1
            bp = b ^ (1 << (n_qubits - 1 - tgt)) if cb else b
            M[bp, b] = 1.0
        return M

    for (gate, wire), ang in zip(circuit, q_params):
        half = ang / 2.0
        if gate == 'rx':
            G = np.array([[np.cos(half), -1j * np.sin(half)],
                          [-1j * np.sin(half), np.cos(half)]])
            Gf = embed(G, wire)
        elif gate == 'ry':
            G = np.array([[np.cos(half), -np.sin(half)],
                          [np.sin(half), np.cos(half)]])
            Gf = embed(G, wire)
        elif gate == 'rz':
            G = np.array([[np.exp(-1j * half), 0.0],
                          [0.0, np.exp(1j * half)]])
            Gf = embed(G, wire)
        elif gate == 'cnot':
            Gf = cnot_full(wire, (wire + 1) % n_qubits)
        else:
            raise ValueError(gate)
        U = Gf @ U
    return U


def make_params(preW, preb, circuit, q_params, postW, postb, n_qubits=N_QUBITS):
    """preW: (input_dim, n_qubits), preb: (1, n_qubits), postW: (n_qubits, n_classes),
    postb: (1, n_classes). Returns kernel-ready constant-folded params."""
    dim = 1 << n_qubits
    U = build_circuit_unitary(circuit, np.asarray(q_params, np.float64), n_qubits)
    Ucat = np.vstack([np.real(U), np.imag(U)]).astype(np.float32)          # (2*dim, dim)

    bits = np.zeros((dim, n_qubits), np.float32)
    for b in range(dim):
        for i in range(n_qubits):
            bits[b, i] = (b >> (n_qubits - 1 - i)) & 1
    zsign = (1.0 - 2.0 * bits).astype(np.float32)                          # (dim, n_qubits)
    W2 = zsign @ np.asarray(postW, np.float32)                             # (dim, n_classes)
    W2T = np.vstack([W2, W2]).T.astype(np.float32)                         # (n_classes, 2*dim)

    return (jnp.asarray(np.asarray(preW, np.float32).T).astype(jnp.bfloat16),  # (n_qubits, D_in)
            jnp.asarray(np.asarray(preb, np.float32).reshape(-1, 1)),          # (n_qubits, 1)
            jnp.asarray(Ucat),                                                 # (2*dim, dim)
            jnp.asarray(W2T),                                                  # (n_classes, 2*dim)
            jnp.asarray(np.asarray(postb, np.float32).reshape(-1, 1)))         # (n_classes, 1)


def reference_forward(x, preW, preb, circuit, q_params, postW, postb, n_qubits):
    a = x @ preW + preb
    theta = np.tanh(a) * (np.pi / 3.0)
    U = build_circuit_unitary(circuit, q_params, n_qubits)
    evs = []
    for t in theta:
        psi = np.array([1.0 + 0j])
        for i in range(n_qubits):
            psi = np.kron(psi, np.array([np.cos(t[i] / 2.0), np.sin(t[i] / 2.0)],
                                        dtype=np.complex128))
        psi = U @ psi
        prob = np.abs(psi) ** 2
        ev = [sum(prob[b] * (1 - 2 * ((b >> (n_qubits - 1 - i)) & 1))
                  for b in range(len(prob))) for i in range(n_qubits)]
        evs.append(ev)
    evs = np.array(evs)
    return evs @ postW + postb


if __name__ == "__main__":
    B, input_dim, n_classes = 200, 64, 3          # non-multiple of 128 -> exercises pad + 2-step grid
    circuit = [('ry', 0), ('rx', 1), ('rz', 2), ('cnot', 0),
               ('ry', 3), ('cnot', 2), ('rx', 0), ('rz', 1)]

    key = jax.random.PRNGKey(0)
    kx, k1, k2, k3, k4, k5 = jax.random.split(key, 6)
    x = jax.random.normal(kx, (B, input_dim), jnp.float32)
    preW = (jax.random.normal(k1, (input_dim, N_QUBITS), jnp.float32) / np.sqrt(input_dim))
    preb = 0.1 * jax.random.normal(k2, (1, N_QUBITS), jnp.float32)
    q_params = 0.01 * jax.random.normal(k3, (len(circuit),), jnp.float32)
    postW = 0.5 * jax.random.normal(k4, (N_QUBITS, n_classes), jnp.float32)
    postb = 0.1 * jax.random.normal(k5, (1, n_classes), jnp.float32)

    params = make_params(np.asarray(preW), np.asarray(preb), circuit,
                         np.asarray(q_params), np.asarray(postW), np.asarray(postb))

    out = quantumnet_forward(x, params)           # TB=128, grid of 2 lane-dense batch tiles
    out = jax.block_until_ready(out)

    ref = reference_forward(np.asarray(x, np.float64), np.asarray(preW, np.float64),
                            np.asarray(preb, np.float64), circuit,
                            np.asarray(q_params, np.float64),
                            np.asarray(postW, np.float64), np.asarray(postb, np.float64),
                            N_QUBITS)
    assert out.shape == (B, n_classes)
    assert np.allclose(np.asarray(out), ref, atol=2e-2, rtol=2e-2), (np.asarray(out), ref)
    print("KERNEL_OK")
</pallas_src>

<mosaic_0001>
module attributes {stable_mosaic.version = 11 : i64} {
  func.func @quantumnet_kernel(%arg0: i32, %arg1: memref<128x64xbf16, #tpu.memory_space<vmem>>, %arg2: memref<4x64xbf16, #tpu.memory_space<vmem>>, %arg3: memref<4x1xf32, #tpu.memory_space<vmem>>, %arg4: memref<32x16xf32, #tpu.memory_space<vmem>>, %arg5: memref<3x32xf32, #tpu.memory_space<vmem>>, %arg6: memref<3x1xf32, #tpu.memory_space<vmem>>, %arg7: memref<3x128xf32, #tpu.memory_space<vmem>>) attributes {dimension_semantics = [#tpu.dimension_semantics<parallel>], iteration_bounds = array<i64: 2>, scalar_prefetch = 0 : i64, scratch_operands = 0 : i64, tpu.core_type = #tpu.core_type<tc>, window_params = [{transform_indices = @transform_0, window_bounds = array<i64: 128, 64>}, {pipeline_mode = #tpu.pipeline_mode<synchronous>, transform_indices = @transform_1, window_bounds = array<i64: 4, 64>}, {pipeline_mode = #tpu.pipeline_mode<synchronous>, transform_indices = @transform_2, window_bounds = array<i64: 4, 1>}, {pipeline_mode = #tpu.pipeline_mode<synchronous>, transform_indices = @transform_3, window_bounds = array<i64: 32, 16>}, {pipeline_mode = #tpu.pipeline_mode<synchronous>, transform_indices = @transform_4, window_bounds = array<i64: 3, 32>}, {pipeline_mode = #tpu.pipeline_mode<synchronous>, transform_indices = @transform_5, window_bounds = array<i64: 3, 1>}, {transform_indices = @transform_6, window_bounds = array<i64: 3, 128>}]} {
    %c0 = arith.constant 0 : index
    %c0_0 = arith.constant 0 : index
    %0 = vector.load %arg2[%c0, %c0_0] : memref<4x64xbf16, #tpu.memory_space<vmem>>, vector<4x64xbf16>
    %c0_1 = arith.constant 0 : index
    %c0_2 = arith.constant 0 : index
    %1 = vector.load %arg1[%c0_1, %c0_2] : memref<128x64xbf16, #tpu.memory_space<vmem>>, vector<128x64xbf16>
    %cst = arith.constant dense<0.000000e+00> : vector<4x128xf32>
    %2 = tpu.matmul %0, %1, %cst {dimension_numbers = #tpu.dot_dimension_numbers<[1], [1], [0], [0], [0, 0, 1, 0], [], []>} : vector<4x64xbf16>, vector<128x64xbf16>, vector<4x128xf32> -> vector<4x128xf32>
    %c0_3 = arith.constant 0 : index
    %c0_4 = arith.constant 0 : index
    %3 = vector.load %arg3[%c0_3, %c0_4] : memref<4x1xf32, #tpu.memory_space<vmem>>, vector<4x1xf32>
    %4 = vector.broadcast %3 : vector<4x1xf32> to vector<4x128xf32>
    %5 = arith.addf %2, %4 : vector<4x128xf32>
    %6 = math.tanh %5 : vector<4x128xf32>
    %cst_5 = arith.constant 1.04719758 : f32
    %7 = vector.broadcast %cst_5 : f32 to vector<4x128xf32>
    %8 = arith.mulf %6, %7 : vector<4x128xf32>
    %cst_6 = arith.constant 5.000000e-01 : f32
    %9 = vector.broadcast %cst_6 : f32 to vector<4x128xf32>
    %10 = arith.mulf %9, %8 : vector<4x128xf32>
    %11 = arith.mulf %10, %10 : vector<4x128xf32>
    %cst_7 = arith.constant 0.00138888892 : f32
    %12 = vector.broadcast %cst_7 : f32 to vector<4x128xf32>
    %13 = arith.mulf %11, %12 : vector<4x128xf32>
    %cst_8 = arith.constant 0.0416666679 : f32
    %14 = vector.broadcast %cst_8 : f32 to vector<4x128xf32>
    %15 = arith.subf %14, %13 : vector<4x128xf32>
    %16 = arith.mulf %11, %15 : vector<4x128xf32>
    %cst_9 = arith.constant -5.000000e-01 : f32
    %17 = vector.broadcast %cst_9 : f32 to vector<4x128xf32>
    %18 = arith.addf %17, %16 : vector<4x128xf32>
    %19 = arith.mulf %11, %18 : vector<4x128xf32>
    %cst_10 = arith.constant 1.000000e+00 : f32
    %20 = vector.broadcast %cst_10 : f32 to vector<4x128xf32>
    %21 = arith.addf %20, %19 : vector<4x128xf32>
    %cst_11 = arith.constant 0.00833333377 : f32
    %22 = vector.broadcast %cst_11 : f32 to vector<4x128xf32>
    %23 = arith.mulf %11, %22 : vector<4x128xf32>
    %cst_12 = arith.constant -0.166666672 : f32
    %24 = vector.broadcast %cst_12 : f32 to vector<4x128xf32>
    %25 = arith.addf %24, %23 : vector<4x128xf32>
    %26 = arith.mulf %11, %25 : vector<4x128xf32>
    %cst_13 = arith.constant 1.000000e+00 : f32
    %27 = vector.broadcast %cst_13 : f32 to vector<4x128xf32>
    %28 = arith.addf %27, %26 : vector<4x128xf32>
    %29 = arith.mulf %10, %28 : vector<4x128xf32>
    %30 = tpu.iota {dimensions = array<i32: 0>} : vector<16x128xi32>
    %c8_i32 = arith.constant 8 : i32
    %31 = vector.broadcast %c8_i32 : i32 to vector<16x128xi32>
    %32 = arith.andi %30, %31 : vector<16x128xi32>
    %c0_i32 = arith.constant 0 : i32
    %33 = vector.broadcast %c0_i32 : i32 to vector<16x128xi32>
    %34 = arith.cmpi ne, %32, %33 : vector<16x128xi32>
    %35 = vector.extract_strided_slice %29 {offsets = [0, 0], sizes = [1, 128], strides = [1, 1]} : vector<4x128xf32> to vector<1x128xf32>
    %36 = vector.extract_strided_slice %21 {offsets = [0, 0], sizes = [1, 128], strides = [1, 1]} : vector<4x128xf32> to vector<1x128xf32>
    %37 = vector.shape_cast %35 : vector<1x128xf32> to vector<1x128xf32>
    %38 = vector.broadcast %37 : vector<1x128xf32> to vector<16x128xf32>
    %39 = vector.shape_cast %36 : vector<1x128xf32> to vector<1x128xf32>
    %40 = vector.broadcast %39 : vector<1x128xf32> to vector<16x128xf32>
    %41 = arith.select %34, %38, %40 : vector<16x128xi1>, vector<16x128xf32>
    %c4_i32 = arith.constant 4 : i32
    %42 = vector.broadcast %c4_i32 : i32 to vector<16x128xi32>
    %43 = arith.andi %30, %42 : vector<16x128xi32>
    %c0_i32_14 = arith.constant 0 : i32
    %44 = vector.broadcast %c0_i32_14 : i32 to vector<16x128xi32>
    %45 = arith.cmpi ne, %43, %44 : vector<16x128xi32>
    %46 = vector.extract_strided_slice %29 {offsets = [1, 0], sizes = [1, 128], strides = [1, 1]} : vector<4x128xf32> to vector<1x128xf32>
    %47 = vector.extract_strided_slice %21 {offsets = [1, 0], sizes = [1, 128], strides = [1, 1]} : vector<4x128xf32> to vector<1x128xf32>
    %48 = vector.shape_cast %46 : vector<1x128xf32> to vector<1x128xf32>
    %49 = vector.broadcast %48 : vector<1x128xf32> to vector<16x128xf32>
    %50 = vector.shape_cast %47 : vector<1x128xf32> to vector<1x128xf32>
    %51 = vector.broadcast %50 : vector<1x128xf32> to vector<16x128xf32>
    %52 = arith.select %45, %49, %51 : vector<16x128xi1>, vector<16x128xf32>
    %53 = arith.mulf %41, %52 : vector<16x128xf32>
    %c2_i32 = arith.constant 2 : i32
    %54 = vector.broadcast %c2_i32 : i32 to vector<16x128xi32>
    %55 = arith.andi %30, %54 : vector<16x128xi32>
    %c0_i32_15 = arith.constant 0 : i32
    %56 = vector.broadcast %c0_i32_15 : i32 to vector<16x128xi32>
    %57 = arith.cmpi ne, %55, %56 : vector<16x128xi32>
    %58 = vector.extract_strided_slice %29 {offsets = [2, 0], sizes = [1, 128], strides = [1, 1]} : vector<4x128xf32> to vector<1x128xf32>
    %59 = vector.extract_strided_slice %21 {offsets = [2, 0], sizes = [1, 128], strides = [1, 1]} : vector<4x128xf32> to vector<1x128xf32>
    %60 = vector.shape_cast %58 : vector<1x128xf32> to vector<1x128xf32>
    %61 = vector.broadcast %60 : vector<1x128xf32> to vector<16x128xf32>
    %62 = vector.shape_cast %59 : vector<1x128xf32> to vector<1x128xf32>
    %63 = vector.broadcast %62 : vector<1x128xf32> to vector<16x128xf32>
    %64 = arith.select %57, %61, %63 : vector<16x128xi1>, vector<16x128xf32>
    %65 = arith.mulf %53, %64 : vector<16x128xf32>
    %c1_i32 = arith.constant 1 : i32
    %66 = vector.broadcast %c1_i32 : i32 to vector<16x128xi32>
    %67 = arith.andi %30, %66 : vector<16x128xi32>
    %c0_i32_16 = arith.constant 0 : i32
    %68 = vector.broadcast %c0_i32_16 : i32 to vector<16x128xi32>
    %69 = arith.cmpi ne, %67, %68 : vector<16x128xi32>
    %70 = vector.extract_strided_slice %29 {offsets = [3, 0], sizes = [1, 128], strides = [1, 1]} : vector<4x128xf32> to vector<1x128xf32>
    %71 = vector.extract_strided_slice %21 {offsets = [3, 0], sizes = [1, 128], strides = [1, 1]} : vector<4x128xf32> to vector<1x128xf32>
    %72 = vector.shape_cast %70 : vector<1x128xf32> to vector<1x128xf32>
    %73 = vector.broadcast %72 : vector<1x128xf32> to vector<16x128xf32>
    %74 = vector.shape_cast %71 : vector<1x128xf32> to vector<1x128xf32>
    %75 = vector.broadcast %74 : vector<1x128xf32> to vector<16x128xf32>
    %76 = arith.select %69, %73, %75 : vector<16x128xi1>, vector<16x128xf32>
    %77 = arith.mulf %65, %76 : vector<16x128xf32>
    %c0_17 = arith.constant 0 : index
    %c0_18 = arith.constant 0 : index
    %78 = vector.load %arg4[%c0_17, %c0_18] : memref<32x16xf32, #tpu.memory_space<vmem>>, vector<32x16xf32>
    %cst_19 = arith.constant dense<0.000000e+00> : vector<32x128xf32>
    %79 = tpu.matmul %78, %77, %cst_19 {dimension_numbers = #tpu.dot_dimension_numbers<[1], [0], [0], [1], [0, 0, 1, 1], [], []>} : vector<32x16xf32>, vector<16x128xf32>, vector<32x128xf32> -> vector<32x128xf32>
    %c0_20 = arith.constant 0 : index
    %c0_21 = arith.constant 0 : index
    %80 = vector.load %arg5[%c0_20, %c0_21] : memref<3x32xf32, #tpu.memory_space<vmem>>, vector<3x32xf32>
    %81 = arith.mulf %79, %79 : vector<32x128xf32>
    %cst_22 = arith.constant dense<0.000000e+00> : vector<3x128xf32>
    %82 = tpu.matmul %80, %81, %cst_22 {dimension_numbers = #tpu.dot_dimension_numbers<[1], [0], [0], [1], [0, 0, 1, 1], [], []>} : vector<3x32xf32>, vector<32x128xf32>, vector<3x128xf32> -> vector<3x128xf32>
    %c0_23 = arith.constant 0 : index
    %c0_24 = arith.constant 0 : index
    %83 = vector.load %arg6[%c0_23, %c0_24] : memref<3x1xf32, #tpu.memory_space<vmem>>, vector<3x1xf32>
    %84 = vector.broadcast %83 : vector<3x1xf32> to vector<3x128xf32>
    %85 = arith.addf %82, %84 : vector<3x128xf32>
    %c0_25 = arith.constant 0 : index
    %c0_26 = arith.constant 0 : index
    %86 = vector.load %arg7[%c0_25, %c0_26] : memref<3x128xf32, #tpu.memory_space<vmem>>, vector<3x128xf32>
    tpu.vector_store %arg7[%c0_25, %c0_26], %85 {strides = array<i32>} : memref<3x128xf32, #tpu.memory_space<vmem>>, vector<3x128xf32>,
    return
  }
  func.func @transform_0(%arg0: i32) -> (i32, i32) {
    %c0_i32 = arith.constant 0 : i32
    %c0_i32_0 = arith.constant 0 : i32
    return %arg0, %c0_i32 : i32, i32
  }
  func.func @transform_1(%arg0: i32) -> (i32, i32) {
    %c0_i32 = arith.constant 0 : i32
    %c0_i32_0 = arith.constant 0 : i32
    %c0_i32_1 = arith.constant 0 : i32
    return %c0_i32, %c0_i32_0 : i32, i32
  }
  func.func @transform_2(%arg0: i32) -> (i32, i32) {
    %c0_i32 = arith.constant 0 : i32
    %c0_i32_0 = arith.constant 0 : i32
    %c0_i32_1 = arith.constant 0 : i32
    return %c0_i32, %c0_i32_0 : i32, i32
  }
  func.func @transform_3(%arg0: i32) -> (i32, i32) {
    %c0_i32 = arith.constant 0 : i32
    %c0_i32_0 = arith.constant 0 : i32
    %c0_i32_1 = arith.constant 0 : i32
    return %c0_i32, %c0_i32_0 : i32, i32
  }
  func.func @transform_4(%arg0: i32) -> (i32, i32) {
    %c0_i32 = arith.constant 0 : i32
    %c0_i32_0 = arith.constant 0 : i32
    %c0_i32_1 = arith.constant 0 : i32
    return %c0_i32, %c0_i32_0 : i32, i32
  }
  func.func @transform_5(%arg0: i32) -> (i32, i32) {
    %c0_i32 = arith.constant 0 : i32
    %c0_i32_0 = arith.constant 0 : i32
    %c0_i32_1 = arith.constant 0 : i32
    return %c0_i32, %c0_i32_0 : i32, i32
  }
  func.func @transform_6(%arg0: i32) -> (i32, i32) {
    %c0_i32 = arith.constant 0 : i32
    %c0_i32_0 = arith.constant 0 : i32
    return %c0_i32, %arg0 : i32, i32
  }
}

</mosaic_0001>

<bundles_post_ra>
// kernel: tpu_custom_call.1
= control target key start
LH: loop header
LB: loop body
LE: loop exit
PB: predicated region body
PF: predicated region fallthrough
CT: control target
= control target key end

     0   :  { %11 = vsyncpa [#allocation3], 0  ;;  %s1126_s0 = inlined_call_operand.vmem [shape: bf16[256,64], index: 0, kind: input, shape index: {}]   ;;  %s1127_s1 = inlined_call_operand.vmem [shape: bf16[4,64], index: 1, kind: input, shape index: {}]   ;;  %s1128_s2 = inlined_call_operand.vmem [shape: f32[4,1], index: 2, kind: input, shape index: {}]   ;;  %s1129_s3 = inlined_call_operand.vmem [shape: f32[32,16], index: 3, kind: input, shape index: {}]   ;;  %s1130_s4 = inlined_call_operand.vmem [shape: f32[3,32], index: 4, kind: input, shape index: {}]   ;;  %s1131_s5 = inlined_call_operand.vmem [shape: f32[3,1], index: 5, kind: input, shape index: {}]   ;;  %s1132_s6 = inlined_call_operand.hbm [shape: f32[3,256], index: 6, kind: output, shape index: {}]  }
   0x1   :  { %13 = vsyncpa [#allocation3 + $0x1], 0  ;;  %s965_s21 = smov 0   ;;  %s967_s22 = smov 0  }
   0x2   :  { %s969_s23 = smov 0   ;;  %s971_s24 = smov 0  }
   0x3 LB: > { %s986_s25 = sadd.s32 4294967295, %s924_s24   ;;  %s725_s26 = sadd.s32 4294967294, %s924_s24   ;;  %s924_s24 = sphi %s971_s24, %s1140_s24   ;;  %s920_s23 = sphi %s969_s23, %s1139_s23   ;;  %s916_s22 = sphi %s967_s22, %s1138_s22   ;;  %s912_s21 = sphi %s965_s21, %s1137_s21  }
   0x4   : > { %s990_s27 = sadd.s32 1, %s924_s24   ;;  %s157_s28 = sadd.s32 1, %s920_s23 }
   0x5   : > { %s154_s29 = ssub.s32 %s924_s24, %s990_s27  ;;  %p167_p0 = scmp.ne.s32.totalorder %s920_s23, %s916_s22 }
   0x6   : > { %p155_p1 = scmp.eq.s32.totalorder %s154_s29, 0  ;;  %p168_p2 = scmp.eq.s32.totalorder %s986_s25, 1 }
   0x7   : > { %p173_p3 = scmp.ne.s32.totalorder %s916_s22, %s912_s21  ;;  %p174_p4 = scmp.eq.s32.totalorder %s725_s26, 1 }
   0x8   : > { %s1001_s30 = scalar_select %p155_p1, %s920_s23, %s157_s28  }
   0x9   : > { %p1003_p5 = por %p168_p2, %p167_p0  ;;  %p1007_p6 = por %p174_p4, %p173_p3 }
   0xa   : > { %p728_p7 = scmp.ge.s32.totalorder %s924_s24, 1  ;;  %p216_p8 = scmp.lt.s32.totalorder %s924_s24, 3 }
   0xc   : > { %p217_p9 = pnand %p728_p7, %p216_p8 }
   0xd   : > { %s730_s9 = sshll.u32 (!%p217_p9), %s986_s25, 4  ;;  %s243_s15 = sand.u32 (!%p217_p9), 1, %s916_s22  }
   0xe   : > { %220 = sbr.rel (%p217_p9) target bundleno = 741 (0x2e5), region = 44  ;;  %p247_p10 = scmp.lt.s32.totalorder (!%p217_p9), %s730_s9, 31 }
   0xf   : > { %s729_s16 = sshll.u32 (!%p217_p9), %s243_s15, 2  ;;  %s653_s29 = scalar_lea.sflag (!%p217_p9), [#allocation3], %s243_s15 }
  0x10   : > { %s245_s18 = scalar_lea.vmem (!%p217_p9), [#allocation2], %s729_s16 }
  0x11   : > { %s666_s19 = sshll.u32 (!%p217_p9), %s245_s18, 4  ;;  %s667_s19 = int_to_ptr.vmem [resolvable:$true] %s666_s19 }
  0x13   : > { %v926_v0 = vmov 0.0   ;;  %vm927_vm0 = vmmov 0   ;;  %v270_v1 = vld [vmem:[%s1128_s2] sm:$0xf]  ;;  %v928_v2 = vmov 0   ;;  %s1142_s9 = smov (!%p247_p10, %s730_s9), 31  ;;  %v399_v30 = vlaneseq }
  0x14   : > { %770 = vmatprep.subr.bf16.mxu0 %v926_v0  ;;  %786 = vmatprep.mubr.msk.bf16.mxu0 %vm927_vm0, %v926_v0  ;;  %v571_v3 = vld [vmem:[%s1131_s5] sm:$0x7]  ;;  %s731_s14 = sshll.u32 %s1142_s9, 2  ;;  %vm316_vm1 = vcmask 523264   ;;  %vm468_vm2 = vcmask 130048   ;;  %vm577_vm9 = vcmask 261120  }
  0x15   : > { %853 = vset.pattern.permute.xlu0 %v928_v2  ;;  %s1026_s17 = scalar_lea.vmem %s1126_s0, %s731_s14  ;;  %v253_v20 = vld [vmem:[%s1127_s1] sm:$0x3]  ;;  %v400_v33 = vshrl.u32 %v399_v30, 7  ;;  %s864_s9 = scalar_lea.vmem %s667_s19, 64 }
  0x16   : > { %273 = vperm.xlu0 %853, %v270_v1   ;;  %v854_v4 = vld [vmem:[%s1026_s17 + $0x38] sm:$0xff]   ;;  %v855_v6 = vld [vmem:[%s1026_s17 + $0x30] sm:$0xff]   ;;  %v856_v8 = vld [vmem:[%s1026_s17 + $0x28] sm:$0xff]   ;;  %p865_p11 = scmp.ne.s32.totalorder %s667_s19, %s864_s9 }
  0x17   : > { %v342_v5 = vsel %vm316_vm1, %v854_v4, 0  ;;  %v339_v7 = vsel %vm316_vm1, %v855_v6, 0  ;;  %v336_v9 = vsel %vm316_vm1, %v856_v8, 0  ;;  %v857_v10 = vld [vmem:[%s1026_s17 + $0x20] sm:$0xff]   ;;  %v858_v12 = vld [vmem:[%s1026_s17 + $0x18] sm:$0xff]   ;;  %v859_v14 = vld [vmem:[%s1026_s17 + $0x10] sm:$0xff]  }
  0x18   : > { %771 = vmatpush3.bf16.xpose.msra.mxu0 %v342_v5  ;;  %v333_v11 = vsel %vm316_vm1, %v857_v10, 0  ;;  %v330_v13 = vsel %vm316_vm1, %v858_v12, 0  ;;  %v327_v15 = vsel %vm316_vm1, %v859_v14, 0  ;;  %v860_v16 = vld [vmem:[%s1026_s17 + $0x8] sm:$0xff]   ;;  %v861_v18 = vld [vmem:[%s1026_s17] sm:$0xff]   ;;  %v401_v38 = vadd.s32 8, %v400_v33  ;;  %p866_p12 = pnand %p865_p11, %p1003_p5 }
  0x19   : > { %772 = vmatprep.subr.bf16.mxu0 %v926_v0  ;;  %v324_v17 = vsel %vm316_vm1, %v860_v16, 0  ;;  %v321_v19 = vsel %vm316_vm1, %v861_v18, 0  ;;  %v464_v21 = vld [vmem:[%s1129_s3] sm:$0xff]  ;;  %v416_v44 = vand.u32 4, %v400_v33  ;;  %v422_v47 = vsub.s32 1, %v400_v33  ;;  %v465_v14 = vld [vmem:[%s1129_s3 + $0x8] sm:$0xff] }
  0x1a   : > { %574 = vperm.xlu0 %853, %v571_v3   ;;  %794 = vmatprep.mubr.msk.f32.mxu1 %vm468_vm2, %v464_v21  ;;  %v417_v43 = vand.u32 4, %v401_v38  ;;  %v408_v48 = vsub.s32 0, %v400_v33  ;;  %v433_v49 = vand.u32 2, %v401_v38  ;;  %v432_v50 = vand.u32 2, %v400_v33  ;;  %v467_v16 = vld [vmem:[%s1129_s3 + $0x18] sm:$0xff]  ;;  %s747_s17 = sshll.u32 %s986_s25, 6  ;;  %p867_p13 = pneg %p866_p12 }
  0x1b   : > { %v438_v52 = vsub.s32 2, %v400_v33  ;;  %v449_v54 = vand.u32 1, %v401_v38  ;;  %v454_v55 = vsub.s32 3, %v400_v33  ;;  %vm418_vm4 = vcmp.ne.s32.totalorder %v416_v44, 0  ;;  %s1091_s28 = scalar_lea.hbm %s1132_s6, %s747_s17  ;;  %s929_s25 = smov [#allocation2]  }
  0x1c   : > { %vm1059_vm3 = vcmp.ne.s32.totalorder %v417_v43, 0  ;;  %vm435_vm5 = vcmp.ne.s32.totalorder %v433_v49, 0  ;;  %vm434_vm6 = vcmp.ne.s32.totalorder %v432_v50, 0  ;;  %v448_v61 = vand.u32 1, %v400_v33  ;;  %s868_s10 = sshll.u32 %s929_s25, 4  ;;  %s869_s10 = int_to_ptr.vmem [resolvable:$false] %s868_s10 }
  0x1d   : > { %vm451_vm7 = vcmp.ne.s32.totalorder %v449_v54, 0  ;;  %s870_s11 = scalar_lea.vmem %s869_s10, 128  ;;  %p871_p0 = scmp.lt.s32.totalorder %s667_s19, %s869_s10 }
  0x1e   : > { %vm450_vm8 = vcmp.ne.s32.totalorder %v448_v61, 0  ;;  %p872_p1 = scmp.lt.s32.totalorder %s870_s11, %s864_s9 }
  0x20   : > { %773 = vmatpush3.bf16.xpose.msra.mxu0 %v339_v7  ;;  %p873_p2 = por %p872_p1, %p871_p0 }
  0x21   : > { %774 = vmatprep.subr.bf16.mxu0 %v926_v0 }
  0x22   : > { %p874_p3 = pnand %p873_p2, %p867_p13 }
  0x28   : > { %775 = vmatpush3.bf16.xpose.msra.mxu0 %v336_v9 }
  0x29   : > { %776 = vmatprep.subr.bf16.mxu0 %v926_v0 }
  0x30   : > { %777 = vmatpush3.bf16.xpose.msra.mxu0 %v333_v11 }
  0x31   : > { %778 = vmatprep.subr.bf16.mxu0 %v926_v0 }
  0x38   : > { %779 = vmatpush3.bf16.xpose.msra.mxu0 %v330_v13 }
  0x39   : > { %780 = vmatprep.subr.bf16.mxu0 %v926_v0 }
  0x40   : > { %781 = vmatpush3.bf16.xpose.msra.mxu0 %v327_v15  ;;  %v466_v15 = vld [vmem:[%s1129_s3 + $0x10] sm:$0xff] }
  0x41   : > { %782 = vmatprep.subr.bf16.mxu0 %v926_v0 }
  0x48   : > { %783 = vmatpush3.bf16.xpose.msra.mxu0 %v324_v17 }
  0x49   : > { %784 = vmatprep.subr.bf16.mxu0 %v926_v0 }
  0x50   : > { %785 = vmatpush3.bf16.xpose.msra.mxu0 %v321_v19 }
  0x57   : > { %787 = vmatmul.mubr.msk.bf16.vlgmr.msra.gmra.mxu0 %vm316_vm1, %v253_v20 }
  0x91   : > { %v274_v22 = vpop.permute.xlu0 %273 }
 0x117   : > { %v378_v23 = vpop.f32.mrf.mxu0 }
 0x118   : > { %v379_v24 = vadd.f32 %v378_v23, %v274_v22 }
 0x119   : > { %v788_v25 = vpop.f32.mrf.mxu0 }
 0x11a   : > { %862 = vtanh.f32 %v379_v24  ;;  %v566_v25 = vld [vmem:[%s1130_s4] sm:$0x7] }
 0x11b   : > { %v381_v26 = vpop.f32.mrf.mxu0 }
 0x11c   : > { %v575_v26 = vpop.permute.xlu0 %574 }
 0x11d   : > { %v789_v27 = vpop.f32.mrf.mxu0 }
 0x127   : > { %v863_v28 = vpop.eup %862 }
 0x128   : > { %v385_v29 = vmul.f32 1.0471976, %v863_v28 }
 0x12a   : > { %v386_v31 = vmul.f32 0.5, %v385_v29 }
 0x12c   : > { %v387_v32 = vmul.f32 %v386_v31, %v386_v31 }
 0x12e   : > { %v388_v34 = vmul.f32 0.0013888889, %v387_v32  ;;  %v394_v35 = vmul.f32 0.008333334, %v387_v32 }
 0x130   : > { %v395_v36 = vadd.f32 -0.16666667, %v394_v35  ;;  %v389_v37 = vsub.f32 0.041666668, %v388_v34 }
 0x132   : > { %v396_v39 = vmul.f32 %v395_v36, %v387_v32  ;;  %v390_v40 = vmul.f32 %v389_v37, %v387_v32 }
 0x134   : > { %v397_v41 = vadd.f32 1.0, %v396_v39  ;;  %v391_v42 = vadd.f32 -0.5, %v390_v40 }
 0x136   : > { %v398_v45 = vmul.f32 %v397_v41, %v386_v31  ;;  %v392_v46 = vmul.f32 %v391_v42, %v387_v32 }
 0x138   : > { %v393_v51 = vadd.f32 1.0, %v392_v46  ;;  %v423_v56 = vrot.slane %v398_v45, %v422_v47  ;;  %v409_v60 = vrot.slane %v398_v45, %v408_v48  ;;  %v439_v63 = vrot.slane %v398_v45, %v438_v52 }
 0x139   : > { %v455_v6 = vrot.slane %v398_v45, %v454_v55 }
 0x13a   : > { %v427_v57 = vrot.slane %v393_v51, %v422_v47  ;;  %v443_v58 = vrot.slane %v393_v51, %v438_v52  ;;  %v413_v59 = vrot.slane %v393_v51, %v408_v48  ;;  %v459_v1 = vrot.slane %v393_v51, %v454_v55 }
 0x13c   : > { %v429_v62 = vsel %vm1059_vm3, %v423_v56, %v427_v57  ;;  %v428_v2 = vsel %vm418_vm4, %v423_v56, %v427_v57  ;;  %v445_v5 = vsel %vm435_vm5, %v439_v63, %v443_v58  ;;  %v444_v7 = vsel %vm434_vm6, %v439_v63, %v443_v58 }
 0x13d   : > { %v431_v3 = vmul.f32 %v429_v62, %v409_v60  ;;  %v430_v4 = vmul.f32 %v428_v2, %v413_v59  ;;  %v461_v10 = vsel %vm451_vm7, %v455_v6, %v459_v1  ;;  %v460_v12 = vsel %vm450_vm8, %v455_v6, %v459_v1 }
 0x13f   : > { %v447_v8 = vmul.f32 %v445_v5, %v431_v3  ;;  %v446_v9 = vmul.f32 %v444_v7, %v430_v4 }
 0x141   : > { %v463_v11 = vmul.f32 %v461_v10, %v447_v8  ;;  %v462_v13 = vmul.f32 %v460_v12, %v446_v9 }
 0x143   : > { %790 = vmatprep.subr.mxu1 %v463_v11 }
 0x144   : > { %791 = vmatpush3.msra.mxu1 %v463_v11 }
 0x145   : > { %792 = vmatprep.subr.mxu1 %v462_v13 }
 0x146   : > { %793 = vmatpush3.msra.mxu1 %v462_v13 }
 0x147   : > { %795 = vmatmul.mubr.msk.f32.vlgmr.msra.gmra.mxu1 %vm468_vm2, %v465_v14  ;;  %800 = vmatprep.subr.mxu1 %v926_v0 }
 0x148   : > { %797 = vmatprep.mubr.msk.f32.mxu1 %vm468_vm2, %v466_v15 }
 0x14b   : > { %798 = vmatmul.mubr.msk.f32.gmra.mxu1 %vm468_vm2, %v467_v16 }
 0x14c   : > { %808 = vmatprep.mubr.msk.f32.mxu1 %vm927_vm0, %v926_v0 }
 0x207   : > { %v796_v17 = vpop.f32.mrf.mxu1 }
 0x208   : > { %v568_v23 = vmul.f32 %v796_v17, %v796_v17 }
 0x209   : > { %v547_v18 = vpop.f32.mrf.mxu1 }
 0x20a   : > { %v567_v24 = vmul.f32 %v547_v18, %v547_v18 }
 0x20b   : > { %v799_v19 = vpop.f32.mrf.mxu1 }
 0x20c   : > { %v570_v20 = vmul.f32 %v799_v19, %v799_v19 }
 0x20d   : > { %v557_v21 = vpop.f32.mrf.mxu1 }
 0x20e   : > { %v569_v22 = vmul.f32 %v557_v21, %v557_v21  ;;  %801 = vmatpush3.msra.mxu1 %v570_v20 }
 0x20f   : > { %802 = vmatprep.subr.mxu1 %v926_v0 }
 0x210   : > { %803 = vmatpush3.msra.mxu1 %v569_v22 }
 0x211   : > { %804 = vmatprep.subr.mxu1 %v926_v0 }
 0x212   : > { %805 = vmatpush3.msra.mxu1 %v568_v23 }
 0x213   : > { %806 = vmatprep.subr.mxu1 %v926_v0 }
 0x214   : > { %807 = vmatpush3.msra.mxu1 %v567_v24 }
 0x215   : > { %809 = vmatmul.mubr.msk.f32.vlgmr.msra.gmra.mxu1 %vm577_vm9, %v566_v25 }
 0x2d5   : > { %v647_v27 = vpop.f32.mrf.mxu1 }
 0x2d6   : > { %v648_v28 = vadd.f32 %v647_v27, %v575_v26 }
 0x2d7   : > { %v810_v29 = vpop.f32.mrf.mxu1 }
 0x2d8   : > { %651 = vst [vmem:[%s245_s18] sm:$0x7] %v648_v28 }
 0x2d9   : > { %877 = shalt.err (!%p874_p3)
}
 0x2da   : > { %s878_s12 = scalar_lea.hbm %s1091_s28, 64  ;;  %s882_s15 = scalar_lea.hbm %s1132_s6, 128 }
 0x2db   : > { %p879_p4 = scmp.ne.s32.totalorder %s1091_s28, %s878_s12  ;;  %p883_p9 = scmp.lt.s32.totalorder %s1091_s28, %s1132_s6 }
 0x2dc   : > { %p884_p10 = scmp.lt.s32.totalorder %s882_s15, %s878_s12 }
 0x2dd   : > { %p880_p7 = pnand %p879_p4, %p1003_p5 }
 0x2de   : > { %p885_p11 = por %p884_p10, %p883_p9 }
 0x2df   : > { %p881_p8 = pneg %p880_p7 }
 0x2e1   : > { %p886_p12 = pnand %p885_p11, %p881_p8 }
 0x2e3   : > { %889 = shalt.err (!%p886_p12)
}
 0x2e4   : > { %811 = dma.vmem_to_hbm [thread:$0]  (%p1003_p5), %s667_s19, 64, %s1091_s28, %s653_s29  }
 0x2e5 PF: > { %p817_p13 = scmp.ge.s32.totalorder %s924_s24, 2  ;;  %s678_s18 = sand.u32 1, %s912_s21  }
 0x2e6   : > { %s679_s20 = scalar_lea.sflag [#allocation3], %s678_s18 }
 0x2e7   : > { %p814_p0 = pnand %p817_p13, %p1007_p6 }
 0x2e9   : > { %p815_p1 = pneg %p814_p0 }
 0x2eb   : > { %907 = dma.done.wait (%p815_p1), %s679_s20, 64  }
 0x2ec   : > { %909 = vsyncadd (%p815_p1), %s679_s20, 4294967232  ;;  %p16_p2 = scmp.ge.s32.totalorder %s990_s27, 4   ;;  %s1137_s21 = smov %s916_s22 }
 0x2ed   : > { %s1138_s22 = smov %s920_s23  ;;  %s1139_s23 = smov %s1001_s30 }
 0x2ee   : > { %s1140_s24 = smov %s990_s27  ;;  %18 = sbr.rel (!%p16_p2) target bundleno = 3 (0x3), region = 79 }
 0x2f3   :  { %684 = vsyncpa [#allocation3], 1 }
 0x2f4   :  { %686 = vsyncpa [#allocation3 + $0x1], 1 }

</bundles_post_ra>
